<compile_context>
chip_gen: v6e
topology: v6e:2x2x1
jax: 0.10.0
libtpu: 0.0.40
codegen_flags: <defaults>
</compile_context>

<pallas_src>
import functools

import jax
import jax.numpy as jnp
from jax.experimental import pallas as pl
from jax.experimental.pallas import tpu as pltpu


def _stack_kernel(x_ref, w_fg_ref, gamma_ref, beta_ref, rw_ref, rb_ref,
                  sw_ref, sb_ref, skip_ref, res_ref,
                  res_pad, x3_buf, *, depth, maxpad, eps=1e-5):
    """One grid step == one ResidualLayer.  The residual lives in `res_pad`
    (zero left-padding of `maxpad` rows per batch) across grid steps."""
    layer = pl.program_id(0)
    B, T, C = x_ref.shape
    n = B * T
    S = skip_ref.shape[-1]

    @pl.when(layer == 0)
    def _init():
        # zero the causal-padding rows once; they are never written again
        res_pad[:, :maxpad, :] = jnp.zeros((B, maxpad, C), jnp.float32)
        res_pad[:, maxpad:, :] = x_ref[...]

    # current (unshifted) residual, f32, as a (B*T, C) slab
    x_cur = res_pad[:, maxpad:, :].reshape(n, C)

    # Gather the three causal taps into a (B*T, 3C) slab.  Tap k reads
    # x[t - (2-k)*d] with d = 2**layer; the dilation is resolved with a static
    # per-layer branch so every slice start stays static (no dynamic sublane
    # offsets).  Tap k=2 (no shift) is layer-independent.
    x3_buf[:, 2 * C:] = x_cur
    for li in range(depth):
        @pl.when(layer == li)
        def _gather(li=li):
            d = 2 ** li
            for k in range(2):
                s = maxpad - (2 - k) * d
                x3_buf[:, k * C:(k + 1) * C] = res_pad[:, s:s + T, :].reshape(n, C)

    x3 = x3_buf[...].astype(jnp.bfloat16)                           # (n, 3C)

    # fused filter+gate dilated conv: one bf16 MXU dot, f32 accumulation
    y = jnp.dot(x3, w_fg_ref[...], preferred_element_type=jnp.float32)   # (n, 2C)

    # one-pass training-mode BatchNorm (biased variance) over batch*time, f32
    inv_n = 1.0 / float(n)
    mean = jnp.sum(y, axis=0, keepdims=True) * inv_n                # (1, 2C)
    ex2 = jnp.sum(y * y, axis=0, keepdims=True) * inv_n
    var = jnp.maximum(ex2 - mean * mean, 0.0)
    y = (y - mean) * (jax.lax.rsqrt(var + eps) * gamma_ref[...]) + beta_ref[...]

    # gated activation (filter cols [0, C), gate cols [C, 2C))
    act = jnp.tanh(y[:, :C]) * jax.nn.sigmoid(y[:, C:])             # (n, C)

    # 1x1 residual conv then 1x1 skip conv (bf16 MXU inputs, f32 accum)
    fx = jnp.dot(act.astype(jnp.bfloat16), rw_ref[...],
                 preferred_element_type=jnp.float32) + rb_ref[...]  # (n, C)
    skip = jnp.dot(fx.astype(jnp.bfloat16), sw_ref[...],
                   preferred_element_type=jnp.float32) + sb_ref[...]  # (n, S)

    new_res = fx + x_cur
    res_pad[:, maxpad:, :] = new_res.reshape(B, T, C)    # carry residual in VMEM
    skip_ref[...] = skip.reshape(B, T, S)                # per-layer skip block
    res_ref[...] = new_res.reshape(B, T, C)              # final residual output


def dilated_stack(x_nct, params):
    """PyTorch-convention wrapper.  x_nct: (B, C, T) float32."""
    x = jnp.transpose(x_nct, (0, 2, 1)).astype(jnp.float32)   # -> (B, T, C)
    B, T, C = x.shape
    depth = params["w_fg"].shape[0]
    S = params["sw"].shape[-1]
    maxpad = 2 * (2 ** (depth - 1))       # padding for the largest dilation
    n = B * T

    kernel = functools.partial(_stack_kernel, depth=depth, maxpad=maxpad)

    flops = depth * (2 * n * (3 * C * 2 * C + C * C + C * S) + 20 * n * C)
    transc = depth * 2 * n * C
    bytes_acc = 4 * (B * T * C + depth * B * T * S + B * T * C) \
        + 2 * depth * (3 * C * 2 * C + C * C + C * S) \
        + 4 * depth * (4 * C + C + S)

    skip_bts, res_btc = pl.pallas_call(
        kernel,
        out_shape=(jax.ShapeDtypeStruct((depth, B, T, S), jnp.float32),
                   jax.ShapeDtypeStruct((B, T, C), jnp.float32)),
        grid_spec=pltpu.PrefetchScalarGridSpec(
            num_scalar_prefetch=0,
            grid=(depth,),
            in_specs=[
                pl.BlockSpec((B, T, C), lambda l: (0, 0, 0)),            # x
                pl.BlockSpec((None, 3 * C, 2 * C), lambda l: (l, 0, 0)),  # packed conv W
                pl.BlockSpec((None, 1, 2 * C), lambda l: (l, 0, 0)),      # BN gamma
                pl.BlockSpec((None, 1, 2 * C), lambda l: (l, 0, 0)),      # BN beta
                pl.BlockSpec((None, C, C), lambda l: (l, 0, 0)),          # res 1x1 W
                pl.BlockSpec((None, 1, C), lambda l: (l, 0, 0)),          # res 1x1 b
                pl.BlockSpec((None, C, S), lambda l: (l, 0, 0)),          # skip 1x1 W
                pl.BlockSpec((None, 1, S), lambda l: (l, 0, 0)),          # skip 1x1 b
            ],
            out_specs=(
                pl.BlockSpec((None, B, T, S), lambda l: (l, 0, 0, 0)),    # skips
                pl.BlockSpec((B, T, C), lambda l: (0, 0, 0)),             # residual
            ),
            scratch_shapes=[
                pltpu.VMEM((B, maxpad + T, C), jnp.float32),   # padded residual carry
                pltpu.VMEM((n, 3 * C), jnp.float32),           # gathered tap slab
            ],
        ),
        compiler_params=pltpu.CompilerParams(
            dimension_semantics=("arbitrary",),       # layers are sequential
            vmem_limit_bytes=32 * 1024 * 1024,        # explicit; safe on v5e/v6e/v7x
        ),
        cost_estimate=pl.CostEstimate(flops=flops, transcendentals=transc,
                                      bytes_accessed=bytes_acc),
    )(x, params["w_fg"], params["gamma_fg"], params["beta_fg"],
      params["rw"], params["rb"], params["sw"], params["sb"])

    # single final layout change back to PyTorch conventions
    skips = jnp.transpose(skip_bts, (0, 1, 3, 2))    # (depth, B, S, T)
    out = jnp.transpose(res_btc, (0, 2, 1))          # (B, C, T)
    return skips, out


def init_params(key, residual_size, skip_size, dilation_depth):
    """Builds stacked, pre-transposed / pre-packed parameters.

    Conv weights follow nn.Conv1d (out, in, k) convention and are packed into
    a single (3*C_in, 2*C_out) matrix per layer: rows = [tap0; tap1; tap2],
    cols = [filter | gate].  1x1 weights are stored as (C_in, C_out)."""
    C, S = residual_size, skip_size
    w_fg, rw_l, rb_l, sw_l, sb_l = [], [], [], [], []
    for layer in range(dilation_depth):
        ks = jax.random.split(jax.random.fold_in(key, layer), 6)
        wf = 0.3 * jax.random.normal(ks[0], (C, C, 3), jnp.float32)   # (out, in, k)
        wg = 0.3 * jax.random.normal(ks[1], (C, C, 3), jnp.float32)
        rw = 0.3 * jax.random.normal(ks[2], (C, C), jnp.float32)      # (out, in)
        rb = 0.1 * jax.random.normal(ks[3], (C,), jnp.float32)
        sw = 0.3 * jax.random.normal(ks[4], (S, C), jnp.float32)      # (out, in)
        sb = 0.1 * jax.random.normal(ks[5], (S,), jnp.float32)
        packed = jnp.concatenate(
            [jnp.concatenate([wf[:, :, k].T, wg[:, :, k].T], axis=1)  # (C_in, 2C_out)
             for k in range(3)], axis=0)                              # (3C_in, 2C_out)
        w_fg.append(packed)
        rw_l.append(rw.T)                 # (C_in, C_out)
        rb_l.append(rb.reshape(1, C))
        sw_l.append(sw.T)                 # (C_in, S)
        sb_l.append(sb.reshape(1, S))
    return dict(
        w_fg=jnp.stack(w_fg).astype(jnp.bfloat16),                     # (depth, 3C, 2C)
        gamma_fg=jnp.ones((dilation_depth, 1, 2 * C), jnp.float32),    # BN defaults
        beta_fg=jnp.zeros((dilation_depth, 1, 2 * C), jnp.float32),
        rw=jnp.stack(rw_l).astype(jnp.bfloat16),                       # (depth, C, C)
        rb=jnp.stack(rb_l),                                            # (depth, 1, C)
        sw=jnp.stack(sw_l).astype(jnp.bfloat16),                       # (depth, C, S)
        sb=jnp.stack(sb_l),                                            # (depth, 1, S)
    )


def _ref_dilated_stack(x_nct, params):
    """Pure-JAX reference mirroring the kernel math (bf16 MXU inputs, f32 accum)."""
    x = jnp.transpose(x_nct, (0, 2, 1)).astype(jnp.float32)   # (B, T, C)
    B, T, C = x.shape
    depth = params["w_fg"].shape[0]
    skips = []
    for layer in range(depth):
        d = 2 ** layer
        xpad = jnp.pad(x, ((0, 0), (2 * d, 0), (0, 0)))
        taps = [xpad[:, k * d:k * d + T, :] for k in range(3)]
        x3 = jnp.concatenate(taps, axis=-1).astype(jnp.bfloat16)      # (B, T, 3C)
        y = jnp.einsum("btk,kn->btn", x3, params["w_fg"][layer],
                       preferred_element_type=jnp.float32)            # (B, T, 2C)
        mean = y.mean(axis=(0, 1), keepdims=True)
        var = ((y - mean) ** 2).mean(axis=(0, 1), keepdims=True)
        y = (y - mean) * jax.lax.rsqrt(var + 1e-5) * params["gamma_fg"][layer] \
            + params["beta_fg"][layer]
        act = jnp.tanh(y[..., :C]) * jax.nn.sigmoid(y[..., C:])
        fx = jnp.einsum("btc,cd->btd", act.astype(jnp.bfloat16), params["rw"][layer],
                        preferred_element_type=jnp.float32) + params["rb"][layer]
        skip = jnp.einsum("btc,cs->bts", fx.astype(jnp.bfloat16), params["sw"][layer],
                          preferred_element_type=jnp.float32) + params["sb"][layer]
        skips.append(jnp.transpose(skip, (0, 2, 1)))
        x = fx + x
    return jnp.stack(skips, axis=0), jnp.transpose(x, (0, 2, 1))


if __name__ == "__main__":
    B, C, T = 2, 8, 16          # batch, residual_size, seq length
    S, depth = 16, 3            # skip_size, dilation_depth (dilations 1, 2, 4)

    key = jax.random.PRNGKey(0)
    kx, kp = jax.random.split(key)
    x = jax.random.normal(kx, (B, C, T), jnp.float32)
    params = init_params(kp, C, S, depth)

    skips, out = dilated_stack(x, params)
    skips, out = jax.block_until_ready((skips, out))

    assert skips.shape == (depth, B, S, T), skips.shape
    assert out.shape == (B, C, T), out.shape

    ref_skips, ref_out = _ref_dilated_stack(x, params)
    assert jnp.allclose(skips, ref_skips, atol=1e-2, rtol=1e-2), \
        float(jnp.max(jnp.abs(skips - ref_skips)))
    assert jnp.allclose(out, ref_out, atol=1e-2, rtol=1e-2), \
        float(jnp.max(jnp.abs(out - ref_out)))

    print("KERNEL_OK")
</pallas_src>

<mosaic_0001>
module attributes {stable_mosaic.version = 11 : i64} {
  func.func @_stack_kernel(%arg0: i32, %arg1: memref<2x16x8xf32, #tpu.memory_space<vmem>>, %arg2: memref<1x24x16xbf16, #tpu.memory_space<vmem>>, %arg3: memref<1x1x16xf32, #tpu.memory_space<vmem>>, %arg4: memref<1x1x16xf32, #tpu.memory_space<vmem>>, %arg5: memref<1x8x8xbf16, #tpu.memory_space<vmem>>, %arg6: memref<1x1x8xf32, #tpu.memory_space<vmem>>, %arg7: memref<1x8x16xbf16, #tpu.memory_space<vmem>>, %arg8: memref<1x1x16xf32, #tpu.memory_space<vmem>>, %arg9: memref<1x2x16x16xf32, #tpu.memory_space<vmem>>, %arg10: memref<2x16x8xf32, #tpu.memory_space<vmem>>, %arg11: memref<2x24x8xf32, #tpu.memory_space<vmem>>, %arg12: memref<32x24xf32, #tpu.memory_space<vmem>>) attributes {dimension_semantics = [#tpu.dimension_semantics<arbitrary>], iteration_bounds = array<i64: 3>, scalar_prefetch = 0 : i64, scratch_operands = 2 : i64, tpu.core_type = #tpu.core_type<tc>, window_params = [{pipeline_mode = #tpu.pipeline_mode<synchronous>, transform_indices = @transform_0, window_bounds = array<i64: 2, 16, 8>}, {transform_indices = @transform_1, window_bounds = array<i64: 1, 24, 16>}, {transform_indices = @transform_2, window_bounds = array<i64: 1, 1, 16>}, {transform_indices = @transform_3, window_bounds = array<i64: 1, 1, 16>}, {transform_indices = @transform_4, window_bounds = array<i64: 1, 8, 8>}, {transform_indices = @transform_5, window_bounds = array<i64: 1, 1, 8>}, {transform_indices = @transform_6, window_bounds = array<i64: 1, 8, 16>}, {transform_indices = @transform_7, window_bounds = array<i64: 1, 1, 16>}, {transform_indices = @transform_8, window_bounds = array<i64: 1, 2, 16, 16>}, {pipeline_mode = #tpu.pipeline_mode<synchronous>, transform_indices = @transform_9, window_bounds = array<i64: 2, 16, 8>}]} {
    %c0_i32 = arith.constant 0 : i32
    %0 = arith.cmpi eq, %arg0, %c0_i32 : i32
    %1 = arith.extui %0 : i1 to i32
    %c0_i32_0 = arith.constant 0 : i32
    %2 = arith.cmpi ne, %1, %c0_i32_0 : i32
    scf.if %2 {
      %cst_49 = arith.constant 0.000000e+00 : f32
      %81 = vector.broadcast %cst_49 : f32 to vector<2x8x8xf32>
      %c0_50 = arith.constant 0 : index
      %c0_51 = arith.constant 0 : index
      %c0_52 = arith.constant 0 : index
      %82 = vector.load %arg11[%c0_50, %c0_51, %c0_52] : memref<2x24x8xf32, #tpu.memory_space<vmem>>, vector<2x8x8xf32>
      tpu.vector_store %arg11[%c0_50, %c0_51, %c0_52], %81 {strides = array<i32>} : memref<2x24x8xf32, #tpu.memory_space<vmem>>, vector<2x8x8xf32>,
      %c0_53 = arith.constant 0 : index
      %c0_54 = arith.constant 0 : index
      %c0_55 = arith.constant 0 : index
      %83 = vector.load %arg1[%c0_53, %c0_54, %c0_55] : memref<2x16x8xf32, #tpu.memory_space<vmem>>, vector<2x16x8xf32>
      %c0_56 = arith.constant 0 : index
      %c8_57 = arith.constant 8 : index
      %c0_58 = arith.constant 0 : index
      %84 = vector.load %arg11[%c0_56, %c8_57, %c0_58] : memref<2x24x8xf32, #tpu.memory_space<vmem>>, vector<2x16x8xf32>
      tpu.vector_store %arg11[%c0_56, %c8_57, %c0_58], %83 {strides = array<i32>} : memref<2x24x8xf32, #tpu.memory_space<vmem>>, vector<2x16x8xf32>,
    } else {
    }
    %c0 = arith.constant 0 : index
    %c8 = arith.constant 8 : index
    %c0_1 = arith.constant 0 : index
    %3 = vector.load %arg11[%c0, %c8, %c0_1] : memref<2x24x8xf32, #tpu.memory_space<vmem>>, vector<2x16x8xf32>
    %4 = vector.shape_cast %3 : vector<2x16x8xf32> to vector<32x8xf32>
    %c0_2 = arith.constant 0 : index
    %c16 = arith.constant 16 : index
    %5 = vector.load %arg12[%c0_2, %c16] : memref<32x24xf32, #tpu.memory_space<vmem>>, vector<32x8xf32>
    tpu.vector_store %arg12[%c0_2, %c16], %4 {strides = array<i32>} : memref<32x24xf32, #tpu.memory_space<vmem>>, vector<32x8xf32>,
    %c0_i32_3 = arith.constant 0 : i32
    %6 = arith.cmpi eq, %arg0, %c0_i32_3 : i32
    %7 = arith.extui %6 : i1 to i32
    %c0_i32_4 = arith.constant 0 : i32
    %8 = arith.cmpi ne, %7, %c0_i32_4 : i32
    scf.if %8 {
      %c0_49 = arith.constant 0 : index
      %c6 = arith.constant 6 : index
      %c0_50 = arith.constant 0 : index
      %81 = vector.load %arg11[%c0_49, %c6, %c0_50] : memref<2x24x8xf32, #tpu.memory_space<vmem>>, vector<2x16x8xf32>
      %82 = vector.shape_cast %81 : vector<2x16x8xf32> to vector<32x8xf32>
      %c0_51 = arith.constant 0 : index
      %c0_52 = arith.constant 0 : index
      %83 = vector.load %arg12[%c0_51, %c0_52] : memref<32x24xf32, #tpu.memory_space<vmem>>, vector<32x8xf32>
      tpu.vector_store %arg12[%c0_51, %c0_52], %82 {strides = array<i32>} : memref<32x24xf32, #tpu.memory_space<vmem>>, vector<32x8xf32>,
      %c0_53 = arith.constant 0 : index
      %c7 = arith.constant 7 : index
      %c0_54 = arith.constant 0 : index
      %84 = vector.load %arg11[%c0_53, %c7, %c0_54] : memref<2x24x8xf32, #tpu.memory_space<vmem>>, vector<2x16x8xf32>
      %85 = vector.shape_cast %84 : vector<2x16x8xf32> to vector<32x8xf32>
      %c0_55 = arith.constant 0 : index
      %c8_56 = arith.constant 8 : index
      %86 = vector.load %arg12[%c0_55, %c8_56] : memref<32x24xf32, #tpu.memory_space<vmem>>, vector<32x8xf32>
      tpu.vector_store %arg12[%c0_55, %c8_56], %85 {strides = array<i32>} : memref<32x24xf32, #tpu.memory_space<vmem>>, vector<32x8xf32>,
    } else {
    }
    %c1_i32 = arith.constant 1 : i32
    %9 = arith.cmpi eq, %arg0, %c1_i32 : i32
    %10 = arith.extui %9 : i1 to i32
    %c0_i32_5 = arith.constant 0 : i32
    %11 = arith.cmpi ne, %10, %c0_i32_5 : i32
    scf.if %11 {
      %c0_49 = arith.constant 0 : index
      %c4 = arith.constant 4 : index
      %c0_50 = arith.constant 0 : index
      %81 = vector.load %arg11[%c0_49, %c4, %c0_50] : memref<2x24x8xf32, #tpu.memory_space<vmem>>, vector<2x16x8xf32>
      %82 = vector.shape_cast %81 : vector<2x16x8xf32> to vector<32x8xf32>
      %c0_51 = arith.constant 0 : index
      %c0_52 = arith.constant 0 : index
      %83 = vector.load %arg12[%c0_51, %c0_52] : memref<32x24xf32, #tpu.memory_space<vmem>>, vector<32x8xf32>
      tpu.vector_store %arg12[%c0_51, %c0_52], %82 {strides = array<i32>} : memref<32x24xf32, #tpu.memory_space<vmem>>, vector<32x8xf32>,
      %c0_53 = arith.constant 0 : index
      %c6 = arith.constant 6 : index
      %c0_54 = arith.constant 0 : index
      %84 = vector.load %arg11[%c0_53, %c6, %c0_54] : memref<2x24x8xf32, #tpu.memory_space<vmem>>, vector<2x16x8xf32>
      %85 = vector.shape_cast %84 : vector<2x16x8xf32> to vector<32x8xf32>
      %c0_55 = arith.constant 0 : index
      %c8_56 = arith.constant 8 : index
      %86 = vector.load %arg12[%c0_55, %c8_56] : memref<32x24xf32, #tpu.memory_space<vmem>>, vector<32x8xf32>
      tpu.vector_store %arg12[%c0_55, %c8_56], %85 {strides = array<i32>} : memref<32x24xf32, #tpu.memory_space<vmem>>, vector<32x8xf32>,
    } else {
    }
    %c2_i32 = arith.constant 2 : i32
    %12 = arith.cmpi eq, %arg0, %c2_i32 : i32
    %13 = arith.extui %12 : i1 to i32
    %c0_i32_6 = arith.constant 0 : i32
    %14 = arith.cmpi ne, %13, %c0_i32_6 : i32
    scf.if %14 {
      %c0_49 = arith.constant 0 : index
      %c0_50 = arith.constant 0 : index
      %c0_51 = arith.constant 0 : index
      %81 = vector.load %arg11[%c0_49, %c0_50, %c0_51] : memref<2x24x8xf32, #tpu.memory_space<vmem>>, vector<2x16x8xf32>
      %82 = vector.shape_cast %81 : vector<2x16x8xf32> to vector<32x8xf32>
      %c0_52 = arith.constant 0 : index
      %c0_53 = arith.constant 0 : index
      %83 = vector.load %arg12[%c0_52, %c0_53] : memref<32x24xf32, #tpu.memory_space<vmem>>, vector<32x8xf32>
      tpu.vector_store %arg12[%c0_52, %c0_53], %82 {strides = array<i32>} : memref<32x24xf32, #tpu.memory_space<vmem>>, vector<32x8xf32>,
      %c0_54 = arith.constant 0 : index
      %c4 = arith.constant 4 : index
      %c0_55 = arith.constant 0 : index
      %84 = vector.load %arg11[%c0_54, %c4, %c0_55] : memref<2x24x8xf32, #tpu.memory_space<vmem>>, vector<2x16x8xf32>
      %85 = vector.shape_cast %84 : vector<2x16x8xf32> to vector<32x8xf32>
      %c0_56 = arith.constant 0 : index
      %c8_57 = arith.constant 8 : index
      %86 = vector.load %arg12[%c0_56, %c8_57] : memref<32x24xf32, #tpu.memory_space<vmem>>, vector<32x8xf32>
      tpu.vector_store %arg12[%c0_56, %c8_57], %85 {strides = array<i32>} : memref<32x24xf32, #tpu.memory_space<vmem>>, vector<32x8xf32>,
    } else {
    }
    %c0_7 = arith.constant 0 : index
    %c0_8 = arith.constant 0 : index
    %15 = vector.load %arg12[%c0_7, %c0_8] : memref<32x24xf32, #tpu.memory_space<vmem>>, vector<32x24xf32>
    %16 = arith.truncf %15 : vector<32x24xf32> to vector<32x24xbf16>
    %c0_9 = arith.constant 0 : index
    %c0_10 = arith.constant 0 : index
    %c0_11 = arith.constant 0 : index
    %17 = vector.load %arg2[%c0_9, %c0_10, %c0_11] : memref<1x24x16xbf16, #tpu.memory_space<vmem>>, vector<1x24x16xbf16>
    %18 = vector.shape_cast %17 : vector<1x24x16xbf16> to vector<24x16xbf16>
    %cst = arith.constant dense<0.000000e+00> : vector<32x16xf32>
    %19 = tpu.matmul %16, %18, %cst {dimension_numbers = #tpu.dot_dimension_numbers<[1], [0], [0], [1], [0, 0, 1, 1], [], []>} : vector<32x24xbf16>, vector<24x16xbf16>, vector<32x16xf32> -> vector<32x16xf32>
    %cst_12 = arith.constant dense<0.000000e+00> : vector<16xf32>
    %20 = vector.multi_reduction <add>, %19, %cst_12 [0] : vector<32x16xf32> to vector<16xf32>
    %21 = vector.shape_cast %20 : vector<16xf32> to vector<1x16xf32>
    %cst_13 = arith.constant 3.125000e-02 : f32
    %22 = vector.broadcast %cst_13 : f32 to vector<1x16xf32>
    %23 = arith.mulf %21, %22 : vector<1x16xf32>
    %24 = arith.mulf %19, %19 : vector<32x16xf32>
    %cst_14 = arith.constant dense<0.000000e+00> : vector<16xf32>
    %25 = vector.multi_reduction <add>, %24, %cst_14 [0] : vector<32x16xf32> to vector<16xf32>
    %26 = vector.shape_cast %25 : vector<16xf32> to vector<1x16xf32>
    %cst_15 = arith.constant 3.125000e-02 : f32
    %27 = vector.broadcast %cst_15 : f32 to vector<1x16xf32>
    %28 = arith.mulf %26, %27 : vector<1x16xf32>
    %29 = arith.mulf %23, %23 : vector<1x16xf32>
    %30 = arith.subf %28, %29 : vector<1x16xf32>
    %cst_16 = arith.constant 0.000000e+00 : f32
    %31 = vector.broadcast %cst_16 : f32 to vector<1x16xf32>
    %32 = arith.maximumf %30, %31 : vector<1x16xf32>
    %33 = vector.broadcast %23 : vector<1x16xf32> to vector<32x16xf32>
    %34 = arith.subf %19, %33 : vector<32x16xf32>
    %cst_17 = arith.constant 9.99999974E-6 : f32
    %35 = vector.broadcast %cst_17 : f32 to vector<1x16xf32>
    %36 = arith.addf %32, %35 : vector<1x16xf32>
    %37 = math.rsqrt %36 : vector<1x16xf32>
    %c0_18 = arith.constant 0 : index
    %c0_19 = arith.constant 0 : index
    %c0_20 = arith.constant 0 : index
    %38 = vector.load %arg3[%c0_18, %c0_19, %c0_20] : memref<1x1x16xf32, #tpu.memory_space<vmem>>, vector<1x1x16xf32>
    %39 = vector.shape_cast %38 : vector<1x1x16xf32> to vector<1x16xf32>
    %40 = arith.mulf %37, %39 : vector<1x16xf32>
    %41 = vector.broadcast %40 : vector<1x16xf32> to vector<32x16xf32>
    %42 = arith.mulf %34, %41 : vector<32x16xf32>
    %c0_21 = arith.constant 0 : index
    %c0_22 = arith.constant 0 : index
    %c0_23 = arith.constant 0 : index
    %43 = vector.load %arg4[%c0_21, %c0_22, %c0_23] : memref<1x1x16xf32, #tpu.memory_space<vmem>>, vector<1x1x16xf32>
    %44 = vector.shape_cast %43 : vector<1x1x16xf32> to vector<1x16xf32>
    %45 = vector.broadcast %44 : vector<1x16xf32> to vector<32x16xf32>
    %46 = arith.addf %42, %45 : vector<32x16xf32>
    %47 = vector.extract_strided_slice %46 {offsets = [0, 0], sizes = [32, 8], strides = [1, 1]} : vector<32x16xf32> to vector<32x8xf32>
    %48 = math.tanh %47 : vector<32x8xf32>
    %49 = vector.extract_strided_slice %46 {offsets = [0, 8], sizes = [32, 8], strides = [1, 1]} : vector<32x16xf32> to vector<32x8xf32>
    %50 = arith.negf %49 : vector<32x8xf32>
    %51 = math.exp %50 : vector<32x8xf32>
    %cst_24 = arith.constant 1.000000e+00 : f32
    %52 = vector.broadcast %cst_24 : f32 to vector<32x8xf32>
    %53 = arith.addf %52, %51 : vector<32x8xf32>
    %54 = arith.divf %52, %53 : vector<32x8xf32>
    %55 = arith.mulf %48, %54 : vector<32x8xf32>
    %56 = arith.truncf %55 : vector<32x8xf32> to vector<32x8xbf16>
    %c0_25 = arith.constant 0 : index
    %c0_26 = arith.constant 0 : index
    %c0_27 = arith.constant 0 : index
    %57 = vector.load %arg5[%c0_25, %c0_26, %c0_27] : memref<1x8x8xbf16, #tpu.memory_space<vmem>>, vector<1x8x8xbf16>
    %58 = vector.shape_cast %57 : vector<1x8x8xbf16> to vector<8x8xbf16>
    %cst_28 = arith.constant dense<0.000000e+00> : vector<32x8xf32>
    %59 = tpu.matmul %56, %58, %cst_28 {dimension_numbers = #tpu.dot_dimension_numbers<[1], [0], [0], [1], [0, 0, 1, 1], [], []>} : vector<32x8xbf16>, vector<8x8xbf16>, vector<32x8xf32> -> vector<32x8xf32>
    %c0_29 = arith.constant 0 : index
    %c0_30 = arith.constant 0 : index
    %c0_31 = arith.constant 0 : index
    %60 = vector.load %arg6[%c0_29, %c0_30, %c0_31] : memref<1x1x8xf32, #tpu.memory_space<vmem>>, vector<1x1x8xf32>
    %61 = vector.shape_cast %60 : vector<1x1x8xf32> to vector<1x8xf32>
    %62 = vector.broadcast %61 : vector<1x8xf32> to vector<32x8xf32>
    %63 = arith.addf %59, %62 : vector<32x8xf32>
    %64 = arith.truncf %63 : vector<32x8xf32> to vector<32x8xbf16>
    %c0_32 = arith.constant 0 : index
    %c0_33 = arith.constant 0 : index
    %c0_34 = arith.constant 0 : index
    %65 = vector.load %arg7[%c0_32, %c0_33, %c0_34] : memref<1x8x16xbf16, #tpu.memory_space<vmem>>, vector<1x8x16xbf16>
    %66 = vector.shape_cast %65 : vector<1x8x16xbf16> to vector<8x16xbf16>
    %cst_35 = arith.constant dense<0.000000e+00> : vector<32x16xf32>
    %67 = tpu.matmul %64, %66, %cst_35 {dimension_numbers = #tpu.dot_dimension_numbers<[1], [0], [0], [1], [0, 0, 1, 1], [], []>} : vector<32x8xbf16>, vector<8x16xbf16>, vector<32x16xf32> -> vector<32x16xf32>
    %c0_36 = arith.constant 0 : index
    %c0_37 = arith.constant 0 : index
    %c0_38 = arith.constant 0 : index
    %68 = vector.load %arg8[%c0_36, %c0_37, %c0_38] : memref<1x1x16xf32, #tpu.memory_space<vmem>>, vector<1x1x16xf32>
    %69 = vector.shape_cast %68 : vector<1x1x16xf32> to vector<1x16xf32>
    %70 = vector.broadcast %69 : vector<1x16xf32> to vector<32x16xf32>
    %71 = arith.addf %67, %70 : vector<32x16xf32>
    %72 = arith.addf %63, %4 : vector<32x8xf32>
    %73 = vector.shape_cast %72 : vector<32x8xf32> to vector<2x16x8xf32>
    %c0_39 = arith.constant 0 : index
    %c8_40 = arith.constant 8 : index
    %c0_41 = arith.constant 0 : index
    %74 = vector.load %arg11[%c0_39, %c8_40, %c0_41] : memref<2x24x8xf32, #tpu.memory_space<vmem>>, vector<2x16x8xf32>
    tpu.vector_store %arg11[%c0_39, %c8_40, %c0_41], %73 {strides = array<i32>} : memref<2x24x8xf32, #tpu.memory_space<vmem>>, vector<2x16x8xf32>,
    %75 = vector.shape_cast %71 : vector<32x16xf32> to vector<2x16x16xf32>
    %c0_42 = arith.constant 0 : index
    %c0_43 = arith.constant 0 : index
    %c0_44 = arith.constant 0 : index
    %c0_45 = arith.constant 0 : index
    %76 = vector.load %arg9[%c0_42, %c0_43, %c0_44, %c0_45] : memref<1x2x16x16xf32, #tpu.memory_space<vmem>>, vector<1x2x16x16xf32>
    %77 = vector.shape_cast %76 : vector<1x2x16x16xf32> to vector<2x16x16xf32>
    %78 = vector.shape_cast %75 : vector<2x16x16xf32> to vector<1x2x16x16xf32>
    tpu.vector_store %arg9[%c0_42, %c0_43, %c0_44, %c0_45], %78 {strides = array<i32>} : memref<1x2x16x16xf32, #tpu.memory_space<vmem>>, vector<1x2x16x16xf32>,
    %79 = vector.shape_cast %72 : vector<32x8xf32> to vector<2x16x8xf32>
    %c0_46 = arith.constant 0 : index
    %c0_47 = arith.constant 0 : index
    %c0_48 = arith.constant 0 : index
    %80 = vector.load %arg10[%c0_46, %c0_47, %c0_48] : memref<2x16x8xf32, #tpu.memory_space<vmem>>, vector<2x16x8xf32>
    tpu.vector_store %arg10[%c0_46, %c0_47, %c0_48], %79 {strides = array<i32>} : memref<2x16x8xf32, #tpu.memory_space<vmem>>, vector<2x16x8xf32>,
    return
  }
  func.func @transform_0(%arg0: i32) -> (i32, i32, i32) {
    %c0_i32 = arith.constant 0 : i32
    %c0_i32_0 = arith.constant 0 : i32
    %c0_i32_1 = arith.constant 0 : i32
    %c0_i32_2 = arith.constant 0 : i32
    return %c0_i32, %c0_i32_0, %c0_i32_1 : i32, i32, i32
  }
  func.func @transform_1(%arg0: i32) -> (i32, i32, i32) {
    %c0_i32 = arith.constant 0 : i32
    %c0_i32_0 = arith.constant 0 : i32
    %c0_i32_1 = arith.constant 0 : i32
    return %arg0, %c0_i32, %c0_i32_0 : i32, i32, i32
  }
  func.func @transform_2(%arg0: i32) -> (i32, i32, i32) {
    %c0_i32 = arith.constant 0 : i32
    %c0_i32_0 = arith.constant 0 : i32
    %c0_i32_1 = arith.constant 0 : i32
    return %arg0, %c0_i32, %c0_i32_0 : i32, i32, i32
  }
  func.func @transform_3(%arg0: i32) -> (i32, i32, i32) {
    %c0_i32 = arith.constant 0 : i32
    %c0_i32_0 = arith.constant 0 : i32
    %c0_i32_1 = arith.constant 0 : i32
    return %arg0, %c0_i32, %c0_i32_0 : i32, i32, i32
  }
  func.func @transform_4(%arg0: i32) -> (i32, i32, i32) {
    %c0_i32 = arith.constant 0 : i32
    %c0_i32_0 = arith.constant 0 : i32
    %c0_i32_1 = arith.constant 0 : i32
    return %arg0, %c0_i32, %c0_i32_0 : i32, i32, i32
  }
  func.func @transform_5(%arg0: i32) -> (i32, i32, i32) {
    %c0_i32 = arith.constant 0 : i32
    %c0_i32_0 = arith.constant 0 : i32
    %c0_i32_1 = arith.constant 0 : i32
    return %arg0, %c0_i32, %c0_i32_0 : i32, i32, i32
  }
  func.func @transform_6(%arg0: i32) -> (i32, i32, i32) {
    %c0_i32 = arith.constant 0 : i32
    %c0_i32_0 = arith.constant 0 : i32
    %c0_i32_1 = arith.constant 0 : i32
    return %arg0, %c0_i32, %c0_i32_0 : i32, i32, i32
  }
  func.func @transform_7(%arg0: i32) -> (i32, i32, i32) {
    %c0_i32 = arith.constant 0 : i32
    %c0_i32_0 = arith.constant 0 : i32
    %c0_i32_1 = arith.constant 0 : i32
    return %arg0, %c0_i32, %c0_i32_0 : i32, i32, i32
  }
  func.func @transform_8(%arg0: i32) -> (i32, i32, i32, i32) {
    %c0_i32 = arith.constant 0 : i32
    %c0_i32_0 = arith.constant 0 : i32
    %c0_i32_1 = arith.constant 0 : i32
    %c0_i32_2 = arith.constant 0 : i32
    return %arg0, %c0_i32, %c0_i32_0, %c0_i32_1 : i32, i32, i32, i32
  }
  func.func @transform_9(%arg0: i32) -> (i32, i32, i32) {
    %c0_i32 = arith.constant 0 : i32
    %c0_i32_0 = arith.constant 0 : i32
    %c0_i32_1 = arith.constant 0 : i32
    %c0_i32_2 = arith.constant 0 : i32
    return %c0_i32, %c0_i32_0, %c0_i32_1 : i32, i32, i32
  }
}

</mosaic_0001>

<bundles_post_ra>
// kernel: tpu_custom_call.1
= control target key start
LH: loop header
LB: loop body
LE: loop exit
PB: predicated region body
PF: predicated region fallthrough
CT: control target
= control target key end

     0   :  { %15 = vsyncpa [#allocation5], 0  ;;  %s1566_s0 = inlined_call_operand.vmem [shape: f32[2,16,8], index: 0, kind: input, shape index: {}]   ;;  %s1567_s1 = inlined_call_operand.vmem [shape: bf16[3,24,16], index: 1, kind: input, shape index: {}]   ;;  %s1568_s2 = inlined_call_operand.vmem [shape: f32[3,1,16], index: 2, kind: input, shape index: {}]   ;;  %s1569_s3 = inlined_call_operand.vmem [shape: f32[3,1,16], index: 3, kind: input, shape index: {}]   ;;  %s1570_s4 = inlined_call_operand.vmem [shape: bf16[3,8,8], index: 4, kind: input, shape index: {}]   ;;  %s1571_s5 = inlined_call_operand.vmem [shape: f32[3,1,8], index: 5, kind: input, shape index: {}]   ;;  %s1572_s6 = inlined_call_operand.vmem [shape: bf16[3,8,16], index: 6, kind: input, shape index: {}]   ;;  %s1573_s7 = inlined_call_operand.vmem [shape: f32[3,1,16], index: 7, kind: input, shape index: {}]   ;;  %s1574_s8 = inlined_call_operand.hbm [shape: f32[3,2,16,16], index: 8, kind: output, shape index: {0}]   ;;  %s1575_s9 = inlined_call_operand.vmem [shape: f32[2,16,8], index: 9, kind: output, shape index: {1}]  }
   0x1   :  { %17 = vsyncpa [#allocation5 + $0x1], 0  ;;  %s1320_s30 = smov 0   ;;  %s1322_s10 = smov 0  }
   0x2   :  { %s1324_s11 = smov 0   ;;  %s1326_s12 = smov 0  }
   0x3 LB: > { %1583 = sst [smem:[#allocation7_spill]] %s1247_s30  ;;  %s1341_s13 = sadd.s32 4294967295, %s1259_s12   ;;  %s1259_s12 = sphi %s1326_s12, %s1597_s12   ;;  %s1255_s11 = sphi %s1324_s11, %s1599_s11   ;;  %s1251_s10 = sphi %s1322_s10, %s1601_s10   ;;  %s1247_s30 = sphi %s1320_s30, %s1600_s30  }
   0x4   : > { %1584 = sst [smem:[#allocation8_spill]] %s1255_s11  ;;  %s1057_s14 = sadd.s32 4294967294, %s1259_s12  }
   0x5   : > { %1585 = sst [smem:[#allocation9_spill]] %s1259_s12  ;;  %s1345_s15 = sadd.s32 1, %s1259_s12  }
   0x6   : > { %1586 = sst [smem:[#allocation10_spill]] %s1345_s15  ;;  %s233_s16 = sadd.s32 1, %s1255_s11 }
   0x7   : > { %s230_s17 = ssub.s32 %s1259_s12, %s1345_s15  ;;  %p243_p0 = scmp.ne.s32.totalorder %s1255_s11, %s1251_s10 }
   0x8   : > { %p231_p1 = scmp.eq.s32.totalorder %s230_s17, 0  ;;  %p244_p2 = scmp.eq.s32.totalorder %s1341_s13, 2 }
   0x9   : > { %p249_p3 = scmp.ne.s32.totalorder %s1251_s10, %s1247_s30  ;;  %p250_p4 = scmp.eq.s32.totalorder %s1057_s14, 2 }
   0xa   : > { %s1356_s18 = scalar_select %p231_p1, %s1255_s11, %s233_s16  }
   0xb   : > { %p1358_p5 = por %p244_p2, %p243_p0  ;;  %p1362_p6 = por %p250_p4, %p249_p3 }
   0xc   : > { %1587 = sst [smem:[#allocation11_spill]] %s1356_s18  ;;  %p1060_p7 = scmp.ge.s32.totalorder %s1259_s12, 1 }
   0xd   : > { %s1589_s20 = scalar_select %p1362_p6, 1, 0 }
   0xe   : > { %p338_p8 = scmp.lt.s32.totalorder %s1259_s12, 4 }
   0xf   : > { %1590 = sst [smem:[#allocation12_spill]] %s1589_s20 }
  0x10   : > { %p339_p9 = pnand %p1060_p7, %p338_p8 }
  0x11   : > { %s1576_s21 = sand.u32 (!%p339_p9), 1, %s1251_s10   ;;  %p394_p10 = scmp.lt.s32.totalorder (!%p339_p9), %s1341_s13, 2 }
  0x12   : > { %342 = sbr.rel (%p339_p9) target bundleno = 1373 (0x55d), region = 52  ;;  %s1061_s22 = sshll.u32 (!%p339_p9), %s1576_s21, 5 }
  0x13   : > { %p1065_p11 = scmp.ne.s32.totalorder (!%p339_p9), %s1341_s13, 0 }
  0x17   : > { %s1373_s23 = scalar_select %p394_p10, %s1341_s13, 2 }
  0x18   : > { %423 = sbr.rel (%p1065_p11) target bundleno = 33 (0x21), region = 56 }
  0x19   : > { %s1123_s24 = smul.u32 12, %s1373_s23  ;;  %s1063_s16 = sshll.u32 %s1373_s23, 2 }
  0x1a   : > { %s1393_s20 = scalar_lea.vmem %s1570_s4, %s1063_s16  ;;  %s411_s25 = scalar_lea.vmem %s1571_s5, %s1373_s23 }
  0x1b   : > { %s1388_s18 = scalar_lea.vmem %s1567_s1, %s1123_s24  ;;  %s1402_s28 = scalar_lea.vmem %s1572_s6, %s1063_s16 }
  0x1c   : > { %s418_s21 = scalar_lea.vmem %s1573_s7, %s1373_s23  ;;  %s1408_s24 = scalar_lea.vmem [#allocation4], %s1061_s22 }
  0x1d   : > { %vm424_vm0 = vcmask 64512   ;;  %v427_v0 = vld [vmem:[%s1566_s0] sm:$0xff]  ;;  %v428_v1 = vld [vmem:[%s1566_s0 + $0x8] sm:$0xff]  ;;  %v429_v2 = vld [vmem:[%s1566_s0 + $0x10] sm:$0xff]  ;;  %v1261_v3 = vmov 0.0  }
  0x1e   : > { %425 = vst.msk [vmem:[#allocation2] sm:$0xff] %vm424_vm0, %v1261_v3  ;;  %426 = vst.msk [vmem:[#allocation2 + $0x18] sm:$0xff] %vm424_vm0, %v1261_v3  ;;  %v430_v4 = vld [vmem:[%s1566_s0 + $0x18] sm:$0xff] }
  0x1f   : > { %431 = vst.msk [vmem:[#allocation2 + $0x8] sm:$0xff] %vm424_vm0, %v427_v0  ;;  %432 = vst.msk [vmem:[#allocation2 + $0x10] sm:$0xff] %vm424_vm0, %v428_v1 }
  0x20   : > { %433 = vst.msk [vmem:[#allocation2 + $0x20] sm:$0xff] %vm424_vm0, %v429_v2  ;;  %434 = vst.msk [vmem:[#allocation2 + $0x28] sm:$0xff] %vm424_vm0, %v430_v4 }
  0x21 PF: > { %s1262_s17 = smov 16   ;;  %vm455_vm1 = vcmask 195712   ;;  %s1263_s26 = smov (!%p1065_p11), 8  }
  0x26   : > { %v1427_v6 = vld [vmem:[#allocation2 + $0x8] sm:$0xff]  ;;  %v1433_v8 = vld [vmem:[#allocation2 + $0x10] sm:$0xff] }
  0x27   : > { %v1425_v5 = vld [vmem:[#allocation2 + $0x20] sm:$0xff]  ;;  %443 = vrot.lane.b32.xlu0 %v1427_v6, %s1262_s17  ;;  %v1431_v7 = vld [vmem:[#allocation2 + $0x28] sm:$0xff] }
  0x28   : > { %447 = vrot.lane.b32.xlu1 %v1425_v5, %s1262_s17 }
  0x2b   : > { %445 = vrot.lane.b32.xlu0 %v1433_v8, %s1262_s17 }
  0x2c   : > { %449 = vrot.lane.b32.xlu1 %v1431_v7, %s1262_s17 }
  0x99   : > { %v444_v10 = vpop.permute.xlu0 %443 }
  0x9a   : > { %v448_v9 = vpop.permute.xlu1 %447  ;;  %456 = vst.msk [vmem:[#allocation3] sm:$0xff] %vm455_vm1, %v444_v10 }
  0x9b   : > { %458 = vst.msk [vmem:[#allocation3 + $0x10] sm:$0xff] %vm455_vm1, %v448_v9  ;;  %462 = sbr.rel (%p1065_p11) target bundleno = 281 (0x119), region = 60 }
  0x9d   : > { %v446_v12 = vpop.permute.xlu0 %445 }
  0x9e   : > { %v450_v11 = vpop.permute.xlu1 %449  ;;  %457 = vst.msk [vmem:[#allocation3 + $0x8] sm:$0xff] %vm455_vm1, %v446_v12 }
  0x9f   : > { %459 = vst.msk [vmem:[#allocation3 + $0x18] sm:$0xff] %vm455_vm1, %v450_v11 }
  0xa0   : > { %v474_v13 = vld [vmem:[#allocation2 + $0x1f] sm:$0xff]  ;;  %v472_v14 = vld [vmem:[#allocation2 + $0x7] sm:$0xff]  ;;  %vm467_vm2 = vcmask 64512   ;;  %v473_v18 = vld [vmem:[#allocation2 + $0xf] sm:$0xff]  ;;  %vm492_vm3 = vcmask 130112  }
  0xa1   : > { %484 = vrot.lane.b32.xlu1 %v474_v13, %s1263_s26  ;;  %480 = vrot.lane.b32.xlu0 %v472_v14, %s1263_s26  ;;  %v475_v15 = vld [vmem:[#allocation2 + $0x27] sm:$0xff]  ;;  %v465_v16 = vld [vmem:[#allocation2 + $0x1e] sm:$0xff] }
  0xa2   : > { %v463_v17 = vld [vmem:[#allocation2 + $0x6] sm:$0xff]  ;;  %470 = vst.msk [vmem:[#allocation3 + $0x10] sm:$0xff] %vm467_vm2, %v465_v16  ;;  %v464_v20 = vld [vmem:[#allocation2 + $0xe] sm:$0xff] }
  0xa3   : > { %468 = vst.msk [vmem:[#allocation3] sm:$0xff] %vm467_vm2, %v463_v17  ;;  %v466_v19 = vld [vmem:[#allocation2 + $0x26] sm:$0xff]  ;;  %469 = vst.msk [vmem:[#allocation3 + $0x8] sm:$0xff] %vm467_vm2, %v464_v20 }
  0xa4   : > { %471 = vst.msk [vmem:[#allocation3 + $0x18] sm:$0xff] %vm467_vm2, %v466_v19 }
  0xa5   : > { %486 = vrot.lane.b32.xlu1 %v475_v15, %s1263_s26  ;;  %482 = vrot.lane.b32.xlu0 %v473_v18, %s1263_s26 }
 0x113   : > { %v485_v21 = vpop.permute.xlu1 %484  ;;  %v481_v22 = vpop.permute.xlu0 %480 }
 0x114   : > { %495 = vst.msk [vmem:[#allocation3 + $0x10] sm:$0xff] %vm492_vm3, %v485_v21  ;;  %493 = vst.msk [vmem:[#allocation3] sm:$0xff] %vm492_vm3, %v481_v22 }
 0x117   : > { %v487_v23 = vpop.permute.xlu1 %486  ;;  %v483_v24 = vpop.permute.xlu0 %482 }
 0x118   : > { %496 = vst.msk [vmem:[#allocation3 + $0x18] sm:$0xff] %vm492_vm3, %v487_v23  ;;  %494 = vst.msk [vmem:[#allocation3 + $0x8] sm:$0xff] %vm492_vm3, %v483_v24 }
 0x119 PF: > { %p1067_p12 = scmp.ne.s32.totalorder %s1341_s13, 1 }
 0x11a   : > { %s1264_s29 = smov (!%p1067_p12), 8  }
 0x11b   : > { %500 = sbr.rel (%p1067_p12) target bundleno = 409 (0x199), region = 64 }
 0x120   : > { %v512_v25 = vld [vmem:[#allocation2 + $0x1e] sm:$0xff]  ;;  %v510_v26 = vld [vmem:[#allocation2 + $0x6] sm:$0xff]  ;;  %vm505_vm4 = vcmask 64512   ;;  %v511_v30 = vld [vmem:[#allocation2 + $0xe] sm:$0xff]  ;;  %vm530_vm5 = vcmask 130112  }
 0x121   : > { %522 = vrot.lane.b32.xlu1 %v512_v25, %s1264_s29  ;;  %518 = vrot.lane.b32.xlu0 %v510_v26, %s1264_s29  ;;  %v513_v27 = vld [vmem:[#allocation2 + $0x26] sm:$0xff]  ;;  %v503_v28 = vld [vmem:[#allocation2 + $0x1c] sm:$0xff] }
 0x122   : > { %v501_v29 = vld [vmem:[#allocation2 + $0x4] sm:$0xff]  ;;  %508 = vst.msk [vmem:[#allocation3 + $0x10] sm:$0xff] %vm505_vm4, %v503_v28  ;;  %v502_v32 = vld [vmem:[#allocation2 + $0xc] sm:$0xff] }
 0x123   : > { %506 = vst.msk [vmem:[#allocation3] sm:$0xff] %vm505_vm4, %v501_v29  ;;  %v504_v31 = vld [vmem:[#allocation2 + $0x24] sm:$0xff]  ;;  %507 = vst.msk [vmem:[#allocation3 + $0x8] sm:$0xff] %vm505_vm4, %v502_v32 }
 0x124   : > { %509 = vst.msk [vmem:[#allocation3 + $0x18] sm:$0xff] %vm505_vm4, %v504_v31 }
 0x125   : > { %524 = vrot.lane.b32.xlu1 %v513_v27, %s1264_s29  ;;  %520 = vrot.lane.b32.xlu0 %v511_v30, %s1264_s29 }
 0x193   : > { %v523_v33 = vpop.permute.xlu1 %522  ;;  %v519_v34 = vpop.permute.xlu0 %518 }
 0x194   : > { %533 = vst.msk [vmem:[#allocation3 + $0x10] sm:$0xff] %vm530_vm5, %v523_v33  ;;  %531 = vst.msk [vmem:[#allocation3] sm:$0xff] %vm530_vm5, %v519_v34 }
 0x197   : > { %v525_v35 = vpop.permute.xlu1 %524  ;;  %v521_v36 = vpop.permute.xlu0 %520 }
 0x198   : > { %534 = vst.msk [vmem:[#allocation3 + $0x18] sm:$0xff] %vm530_vm5, %v525_v35  ;;  %532 = vst.msk [vmem:[#allocation3 + $0x8] sm:$0xff] %vm530_vm5, %v521_v36 }
 0x199 PF: > { %p1068_p13 = scmp.ne.s32.totalorder %s1341_s13, 2 }
 0x19a   : > { %s1265_s11 = smov (!%p1068_p13), 8  }
 0x19b   : > { %538 = sbr.rel (%p1068_p13) target bundleno = 537 (0x219), region = 68 }
 0x1a0   : > { %v550_v37 = vld [vmem:[#allocation2 + $0x1c] sm:$0xff]  ;;  %v548_v38 = vld [vmem:[#allocation2 + $0x4] sm:$0xff]  ;;  %vm543_vm6 = vcmask 64512   ;;  %v549_v42 = vld [vmem:[#allocation2 + $0xc] sm:$0xff]  ;;  %vm568_vm7 = vcmask 130112  }
 0x1a1   : > { %560 = vrot.lane.b32.xlu1 %v550_v37, %s1265_s11  ;;  %556 = vrot.lane.b32.xlu0 %v548_v38, %s1265_s11  ;;  %v551_v39 = vld [vmem:[#allocation2 + $0x24] sm:$0xff]  ;;  %v541_v40 = vld [vmem:[#allocation2 + $0x18] sm:$0xff] }
 0x1a2   : > { %v539_v41 = vld [vmem:[#allocation2] sm:$0xff]  ;;  %546 = vst.msk [vmem:[#allocation3 + $0x10] sm:$0xff] %vm543_vm6, %v541_v40  ;;  %v540_v44 = vld [vmem:[#allocation2 + $0x8] sm:$0xff] }
 0x1a3   : > { %544 = vst.msk [vmem:[#allocation3] sm:$0xff] %vm543_vm6, %v539_v41  ;;  %v542_v43 = vld [vmem:[#allocation2 + $0x20] sm:$0xff]  ;;  %545 = vst.msk [vmem:[#allocation3 + $0x8] sm:$0xff] %vm543_vm6, %v540_v44 }
 0x1a4   : > { %547 = vst.msk [vmem:[#allocation3 + $0x18] sm:$0xff] %vm543_vm6, %v542_v43 }
 0x1a5   : > { %562 = vrot.lane.b32.xlu1 %v551_v39, %s1265_s11  ;;  %558 = vrot.lane.b32.xlu0 %v549_v42, %s1265_s11 }
 0x213   : > { %v561_v45 = vpop.permute.xlu1 %560  ;;  %v557_v46 = vpop.permute.xlu0 %556 }
 0x214   : > { %571 = vst.msk [vmem:[#allocation3 + $0x10] sm:$0xff] %vm568_vm7, %v561_v45  ;;  %569 = vst.msk [vmem:[#allocation3] sm:$0xff] %vm568_vm7, %v557_v46 }
 0x217   : > { %v563_v47 = vpop.permute.xlu1 %562  ;;  %v559_v48 = vpop.permute.xlu0 %558 }
 0x218   : > { %572 = vst.msk [vmem:[#allocation3 + $0x18] sm:$0xff] %vm568_vm7, %v563_v47  ;;  %570 = vst.msk [vmem:[#allocation3 + $0x8] sm:$0xff] %vm568_vm7, %v559_v48 }
 0x219 PF: > { %v1171_v49 = vld [vmem:[%s1388_s18 + $0x8] ss:$0 sps:$4 sm:$0xff]   ;;  %vm598_vm8 = vcmask 1043456   ;;  %v1172_v50 = vld [vmem:[%s1388_s18] sm:$0xff]   ;;  %vm591_vm9 = vcmask 195584   ;;  %vm651_vm10 = vcmask 130048   ;;  %v695_v38 = vlaneseq  ;;  %s1591_s12 = scalar_lea.vmem %s1568_s2, %s1373_s23  ;;  %s1592_s16 = scalar_lea.vmem %s1569_s3, %s1373_s23 }
 0x21a   : > { %1120 = vmatprep.subr.msk.bf16.mxu0 %vm598_vm8, %v1171_v49  ;;  %v600_v52 = vsel %vm598_vm8, %v1171_v49, 0  ;;  %v693_v40 = vld [vmem:[%s1591_s12] sm:$0x1]  ;;  %s1266_s22 = smov 120   ;;  %vm772_vm11 = vcmask 64512   ;;  %s1089_s27 = sshll.u32 %s1341_s13, 9 }
 0x21b   : > { %v573_v51 = vld [vmem:[#allocation3] sm:$0xff]  ;;  %1101 = vmatpush3.bf16.msra.mxu0 %v600_v52  ;;  %v575_v55 = vld [vmem:[#allocation3 + $0x10] sm:$0xff]  ;;  %v696_v39 = vshrl.u32 %v695_v38, 7  ;;  %s1516_s23 = scalar_lea.hbm %s1574_s8, %s1089_s27  ;;  %s1593_s13 = sand.u32 1, %s1251_s10  }
 0x21c   : > { %1102 = vmatprep.subr.bf16.mxu0 %v1172_v50  ;;  %v1073_v49 = vld [vmem:[%s1592_s16] ss:$0 sm:$0xff]  ;;  %s929_s16 = sshll.u32 %s1408_s24, 4  ;;  %s1518_s16 = int_to_ptr.vmem [resolvable:$true] %s929_s16 }
 0x21d   : > { %v697_v41 = vsub.s32 0, %v696_v39  ;;  %s1199_s14 = scalar_lea.vmem %s1518_s16, 512 }
 0x21e   : > { %p1200_p0 = scmp.ne.s32.totalorder %s1518_s16, %s1199_s14 }
 0x21f   : > { %v574_v53 = vld [vmem:[#allocation3 + $0x8] sm:$0xff]  ;;  %v576_v56 = vld [vmem:[#allocation3 + $0x18] sm:$0xff]  ;;  %1103 = vmatpush3.bf16.msra.mxu0 %v1172_v50 }
 0x220   : > { %v577_v54 = vpack.c.bf16 %v574_v53, %v573_v51  ;;  %v578_v57 = vpack.c.bf16 %v576_v56, %v575_v55  ;;  %p1201_p1 = pnand %p1200_p0, %p1358_p5 }
 0x222   : > { %1104 = vmatprep.mubr.msk.bf16.mxu0 %vm591_vm9, %v577_v54  ;;  %p1202_p2 = pneg %p1201_p1 }
 0x223   : > { %1105 = vmatmul.mubr.msk.bf16.vlgmr.msra.gmra.mxu0 %vm591_vm9, %v578_v57 }
 0x2e3   : > { %v1106_v58 = vpop.f32.mrf.mxu0 }
 0x2e4   : > { %v668_v63 = vmul.f32 %v1106_v58, %v1106_v58  ;;  %v655_v4 = vsel %vm651_vm10, %v1106_v58, 0.0 }
 0x2e5   : > { %v636_v59 = vpop.f32.mrf.mxu0 }
 0x2e6   : > { %v666_v61 = vmul.f32 %v636_v59, %v636_v59  ;;  %v652_v0 = vsel %vm651_vm10, %v636_v59, 0.0  ;;  %v673_v14 = vsel %vm651_vm10, %v668_v63, 0.0 }
 0x2e7   : > { %v1107_v60 = vpop.f32.mrf.mxu0 }
 0x2e8   : > { %v670_v9 = vsel %vm651_vm10, %v666_v61, 0.0  ;;  %v669_v10 = vmul.f32 %v1107_v60, %v1107_v60  ;;  %v657_v15 = vsel %vm651_vm10, %v1107_v60, 0.0 }
 0x2e9   : > { %v639_v62 = vpop.f32.mrf.mxu0 }
 0x2ea   : > { %v653_v1 = vsel %vm651_vm10, %v639_v62, 0.0  ;;  %v667_v2 = vmul.f32 %v639_v62, %v639_v62  ;;  %v675_v18 = vsel %vm651_vm10, %v669_v10, 0.0  ;;  %v764_v10 = vld [vmem:[%s1393_s20] sm:$0xf] }
 0x2eb   : > { %v654_v3 = vadd.f32 %v653_v1, %v652_v0  ;;  %1121 = vmatprep.subr.msk.bf16.mxu1 %vm598_vm8, %v764_v10 }
 0x2ec   : > { %v671_v11 = vsel %vm651_vm10, %v667_v2, 0.0 }
 0x2ed   : > { %v656_v12 = vadd.f32 %v655_v4, %v654_v3  ;;  %v672_v13 = vadd.f32 %v671_v11, %v670_v9  ;;  %v780_v11 = vsel %vm598_vm8, %v764_v10, 0 }
 0x2ee   : > { %1109 = vmatpush3.bf16.msra.mxu1 %v780_v11 }
 0x2ef   : > { %v658_v16 = vadd.f32 %v657_v15, %v656_v12  ;;  %v674_v17 = vadd.f32 %v673_v14, %v672_v13 }
 0x2f1   : > { %v659_v19 = vrot.slane %v658_v16, 4  ;;  %v676_v20 = vadd.f32 %v675_v18, %v674_v17 }
 0x2f3   : > { %v660_v21 = vadd.f32 %v659_v19, %v658_v16  ;;  %v677_v22 = vrot.slane %v676_v20, 4 }
 0x2f5   : > { %v661_v23 = vrot.slane %v660_v21, 2  ;;  %v678_v24 = vadd.f32 %v677_v22, %v676_v20 }
 0x2f7   : > { %v662_v25 = vadd.f32 %v661_v23, %v660_v21  ;;  %v679_v26 = vrot.slane %v678_v24, 2 }
 0x2f9   : > { %v663_v27 = vrot.slane %v662_v25, 1  ;;  %v680_v28 = vadd.f32 %v679_v26, %v678_v24 }
 0x2fb   : > { %v664_v29 = vadd.f32 %v663_v27, %v662_v25  ;;  %v681_v30 = vrot.slane %v680_v28, 1 }
 0x2fd   : > { %v665_v31 = vmul.f32 0.03125, %v664_v29  ;;  %v682_v32 = vadd.f32 %v681_v30, %v680_v28  ;;  %v833_v30 = vld [vmem:[%s1402_s28] sm:$0xf]  ;;  %s1267_s28 = smov [#allocation4]  }
 0x2fe   : > { %1122 = vmatprep.subr.msk.bf16.mxu1 %vm598_vm8, %v833_v30  ;;  %s1203_s17 = sshll.u32 %s1267_s28, 4  ;;  %s1204_s17 = int_to_ptr.vmem [resolvable:$false] %s1203_s17 }
 0x2ff   : > { %v683_v33 = vmul.f32 0.03125, %v682_v32  ;;  %v684_v34 = vmul.f32 %v665_v31, %v665_v31  ;;  %v687_v44 = vsub.f32 %v636_v59, %v665_v31  ;;  %v688_v45 = vsub.f32 %v639_v62, %v665_v31  ;;  %v1078_v32 = vld [vmem:[%s411_s25] ss:$0 sm:$0xff]  ;;  %s1205_s25 = scalar_lea.vmem %s1204_s17, 1024  ;;  %p1206_p3 = scmp.lt.s32.totalorder %s1518_s16, %s1204_s17 }
 0x300   : > { %v689_v46 = vsub.f32 %v1106_v58, %v665_v31  ;;  %v690_v47 = vsub.f32 %v1107_v60, %v665_v31  ;;  %v848_v31 = vsel %vm598_vm8, %v833_v30, 0  ;;  %p1207_p4 = scmp.lt.s32.totalorder %s1205_s25, %s1199_s14 }
 0x301   : > { %v685_v35 = vsub.f32 %v683_v33, %v684_v34 }
 0x302   : > { %p1208_p7 = por %p1207_p4, %p1206_p3 }
 0x303   : > { %v686_v36 = vmax.f32 %v685_v35, 0.0 }
 0x304   : > { %p1209_p8 = pnand %p1208_p7, %p1202_p2 }
 0x305   : > { %v691_v37 = vadd.f32 1e-05, %v686_v36 }
 0x307   : > { %1173 = vrsqrt.f32 %v691_v37 }
 0x314   : > { %v1174_v42 = vpop.eup %1173 }
 0x315   : > { %v694_v43 = vmul.f32 %v1174_v42, %v693_v40 }
 0x317   : > { %v698_v48 = vrot.slane %v694_v43, %v697_v41 }
 0x319   : > { %v699_v50 = vmul.f32 %v698_v48, %v687_v44  ;;  %v700_v51 = vmul.f32 %v698_v48, %v688_v45  ;;  %v701_v52 = vmul.f32 %v698_v48, %v689_v46  ;;  %v702_v53 = vmul.f32 %v698_v48, %v690_v47 }
 0x31b   : > { %v710_v54 = vadd.f32 %v1073_v49, %v699_v50  ;;  %v711_v55 = vadd.f32 %v1073_v49, %v700_v51  ;;  %v712_v56 = vadd.f32 %v1073_v49, %v701_v52  ;;  %v713_v57 = vadd.f32 %v1073_v49, %v702_v53 }
 0x31d   : > { %v1074_v61 = vmul.f32 -1.442695, %v710_v54  ;;  %v1075_v63 = vmul.f32 -1.442695, %v711_v55  ;;  %v1076_v59 = vmul.f32 -1.442695, %v712_v56 }
 0x31e   : > { %v1077_v62 = vmul.f32 -1.442695, %v713_v57 }
 0x31f   : > { %1175 = vpow2.f32 %v1074_v61 }
 0x320   : > { %1177 = vpow2.f32 %v1075_v63 }
 0x321   : > { %1179 = vpow2.f32 %v1076_v59 }
 0x322   : > { %1181 = vpow2.f32 %v1077_v62 }
 0x32c   : > { %v1176_v58 = vpop.eup %1175 }
 0x32d   : > { %v1178_v60 = vpop.eup %1177  ;;  %v730_v0 = vadd.f32 1.0, %v1176_v58 }
 0x32e   : > { %v1180_v1 = vpop.eup %1179  ;;  %v731_v3 = vadd.f32 1.0, %v1178_v60 }
 0x32f   : > { %v1182_v2 = vpop.eup %1181  ;;  %v732_v4 = vadd.f32 1.0, %v1180_v1  ;;  %1183 = vrcp.f32 %v730_v0 }
 0x330   : > { %v733_v9 = vadd.f32 1.0, %v1182_v2 }
 0x331   : > { %1185 = vrcp.f32 %v732_v4 }
 0x332   : > { %1187 = vrcp.f32 %v731_v3 }
 0x333   : > { %1189 = vrcp.f32 %v733_v9 }
 0x334   : > { %1191 = vtanh.f32 %v711_v55 }
 0x335   : > { %1193 = vtanh.f32 %v710_v54 }
 0x336   : > { %1195 = vtanh.f32 %v712_v56 }
 0x337   : > { %1197 = vtanh.f32 %v713_v57 }
 0x33c   : > { %v1184_v12 = vpop.eup %1183 }
 0x33d   : > { %746 = vrot.lane.b32.xlu0 %v1184_v12, %s1266_s22 }
 0x33e   : > { %v1186_v13 = vpop.eup %1185 }
 0x33f   : > { %750 = vrot.lane.b32.xlu1 %v1186_v13, %s1266_s22  ;;  %v1188_v14 = vpop.eup %1187 }
 0x340   : > { %v1190_v15 = vpop.eup %1189 }
 0x341   : > { %748 = vrot.lane.b32.xlu0 %v1188_v14, %s1266_s22  ;;  %v1192_v18 = vpop.eup %1191 }
 0x342   : > { %v1194_v19 = vpop.eup %1193 }
 0x343   : > { %752 = vrot.lane.b32.xlu1 %v1190_v15, %s1266_s22  ;;  %v1196_v21 = vpop.eup %1195 }
 0x344   : > { %v1198_v24 = vpop.eup %1197 }
 0x3af   : > { %v747_v16 = vpop.permute.xlu0 %746 }
 0x3b0   : > { %v758_v22 = vmul.f32 %v1194_v19, %v747_v16 }
 0x3b1   : > { %v751_v17 = vpop.permute.xlu1 %750 }
 0x3b2   : > { %v760_v26 = vmul.f32 %v1196_v21, %v751_v17 }
 0x3b3   : > { %v749_v20 = vpop.permute.xlu0 %748 }
 0x3b4   : > { %v759_v23 = vmul.f32 %v1192_v18, %v749_v20 }
 0x3b5   : > { %v753_v25 = vpop.permute.xlu1 %752 }
 0x3b6   : > { %v761_v27 = vmul.f32 %v1198_v24, %v753_v25  ;;  %v762_v28 = vpack.c.bf16 %v759_v23, %v758_v22 }
 0x3b8   : > { %v763_v29 = vpack.c.bf16 %v761_v27, %v760_v26  ;;  %1110 = vmatprep.mubr.msk.bf16.mxu1 %vm772_vm11, %v762_v28 }
 0x3ba   : > { %1111 = vmatmul.mubr.msk.bf16.vlgmr.msra.gmra.mxu1 %vm772_vm11, %v763_v29 }
 0x3bb   : > { %1115 = vmatpush3.bf16.msra.mxu1 %v848_v31 }
 0x47a   : > { %v1112_v33 = vpop.f32.mrf.mxu1 }
 0x47b   : > { %v825_v34 = vadd.f32 %v1112_v33, %v1078_v32 }
 0x47c   : > { %v816_v35 = vpop.f32.mrf.mxu1 }
 0x47d   : > { %v901_v36 = vadd.f32 %v825_v34, %v1425_v5  ;;  %v817_v37 = vadd.f32 %v1078_v32, %v816_v35 }
 0x47e   : > { %v1113_v38 = vpop.f32.mrf.mxu1 }
 0x47f   : > { %905 = vst.msk [vmem:[#allocation2 + $0x20] sm:$0xff] %vm772_vm11, %v901_v36  ;;  %913 = vst.msk [vmem:[%s1575_s9 + $0x10] sm:$0xff] %vm772_vm11, %v901_v36  ;;  %v899_v39 = vadd.f32 %v817_v37, %v1427_v6  ;;  %v828_v40 = vadd.f32 %v1113_v38, %v1078_v32 }
 0x480   : > { %v819_v41 = vpop.f32.mrf.mxu1 }
 0x481   : > { %903 = vst.msk [vmem:[#allocation2 + $0x8] sm:$0xff] %vm772_vm11, %v899_v39  ;;  %911 = vst.msk [vmem:[%s1575_s9] sm:$0xff] %vm772_vm11, %v899_v39  ;;  %v902_v5 = vadd.f32 %v828_v40, %v1431_v7  ;;  %v820_v42 = vadd.f32 %v1078_v32, %v819_v41  ;;  %v832_v44 = vpack.c.bf16 %v828_v40, %v825_v34  ;;  %v1081_v7 = vld [vmem:[%s418_s21] ss:$0 sm:$0xff]  ;;  %s1526_s21 = scalar_lea.sflag [#allocation5], %s1593_s13 }
 0x483   : > { %906 = vst.msk [vmem:[#allocation2 + $0x28] sm:$0xff] %vm772_vm11, %v902_v5  ;;  %914 = vst.msk [vmem:[%s1575_s9 + $0x18] sm:$0xff] %vm772_vm11, %v902_v5  ;;  %v831_v6 = vpack.c.bf16 %v820_v42, %v817_v37  ;;  %v900_v43 = vadd.f32 %v820_v42, %v1433_v8 }
 0x485   : > { %904 = vst.msk [vmem:[#allocation2 + $0x10] sm:$0xff] %vm772_vm11, %v900_v43  ;;  %912 = vst.msk [vmem:[%s1575_s9 + $0x8] sm:$0xff] %vm772_vm11, %v900_v43  ;;  %1116 = vmatprep.mubr.msk.bf16.mxu1 %vm772_vm11, %v831_v6 }
 0x486   : > { %1117 = vmatmul.mubr.msk.bf16.vlgmr.msra.gmra.mxu1 %vm772_vm11, %v832_v44 }
 0x546   : > { %v1118_v8 = vpop.f32.mrf.mxu1 }
 0x547   : > { %v893_v45 = vadd.f32 %v1118_v8, %v1081_v7 }
 0x548   : > { %v884_v46 = vpop.f32.mrf.mxu1 }
 0x549   : > { %909 = vst.msk [vmem:[%s1408_s24 + $0x10] sm:$0xff] %vm651_vm10, %v893_v45  ;;  %v885_v47 = vadd.f32 %v1081_v7, %v884_v46 }
 0x54a   : > { %v1119_v48 = vpop.f32.mrf.mxu1 }
 0x54b   : > { %907 = vst.msk [vmem:[%s1408_s24] sm:$0xff] %vm651_vm10, %v885_v47  ;;  %v896_v49 = vadd.f32 %v1119_v48, %v1081_v7 }
 0x54c   : > { %v887_v50 = vpop.f32.mrf.mxu1 }
 0x54d   : > { %910 = vst.msk [vmem:[%s1408_s24 + $0x18] sm:$0xff] %vm651_vm10, %v896_v49  ;;  %v888_v51 = vadd.f32 %v1081_v7, %v887_v50 }
 0x54f   : > { %908 = vst.msk [vmem:[%s1408_s24 + $0x8] sm:$0xff] %vm651_vm10, %v888_v51 }
 0x550   : > { %1212 = shalt.err (!%p1209_p8)
}
 0x551   : > { %s1213_s24 = scalar_lea.hbm %s1516_s23, 512  ;;  %s1217_s11 = scalar_lea.hbm %s1574_s8, 1536 }
 0x552   : > { %p1214_p9 = scmp.ne.s32.totalorder %s1516_s23, %s1213_s24  ;;  %p1218_p12 = scmp.lt.s32.totalorder %s1516_s23, %s1574_s8 }
 0x553   : > { %p1219_p13 = scmp.lt.s32.totalorder %s1217_s11, %s1213_s24 }
 0x554   : > { %p1215_p10 = pnand %p1214_p9, %p1358_p5 }
 0x555   : > { %p1220_p0 = por %p1219_p13, %p1218_p12 }
 0x556   : > { %p1216_p11 = pneg %p1215_p10 }
 0x558   : > { %p1221_p1 = pnand %p1220_p0, %p1216_p11 }
 0x55a   : > { %1224 = shalt.err (!%p1221_p1)
}
 0x55b   : > { %s1268_s12 = smov 128   ;;  %s1269_s15 = smov 8  }
 0x55c   : > { %1124 = dma.vmem_to_hbm [thread:$0]  (%p1358_p5), %s1518_s16, 512, %s1516_s23, %s1526_s21, %s1268_s12, %s1268_s12, %s1269_s15  }
 0x55d PF: > { %s1594_s27 = sld [smem:[#allocation9_spill]] }
 0x55e   : > { %s1595_s22 = sld [smem:[#allocation7_spill]] }
 0x563   : > { %p1130_p2 = scmp.ge.s32.totalorder %s1594_s27, 2 }
 0x564   : > { %s950_s13 = sand.u32 1, %s1595_s22  }
 0x565   : > { %p1127_p3 = pnand %p1130_p2, %p1362_p6  ;;  %s951_s14 = scalar_lea.sflag [#allocation5], %s950_s13 }
 0x567   : > { %p1128_p4 = pneg %p1127_p3 }
 0x569   : > { %1242 = dma.done.wait (%p1128_p4), %s951_s14, 512  }
 0x56a   : > { %1244 = vsyncadd (%p1128_p4), %s951_s14, 4294966784  ;;  %s1597_s12 = sld [smem:[#allocation10_spill]]  ;;  %s1600_s30 = smov %s1251_s10 }
 0x56b   : > { %s1598_s28 = sld [smem:[#allocation8_spill]] }
 0x56c   : > { %s1599_s11 = sld [smem:[#allocation11_spill]] }
 0x570   : > { %p20_p7 = scmp.ge.s32.totalorder %s1597_s12, 5  }
 0x571   : > { %s1601_s10 = smov %s1598_s28 }
 0x572   :  { %22 = sbr.rel (!%p20_p7) target bundleno = 3 (0x3), region = 129 }
 0x577   :  { %956 = vsyncpa [#allocation5], 1 }
 0x578   :  { %958 = vsyncpa [#allocation5 + $0x1], 1 }

</bundles_post_ra>
